<compile_context>
chip_gen: v7x
topology: tpu7x:2x2x1
jax: 0.10.0
libtpu: 0.0.40
codegen_flags: <defaults>
</compile_context>

<pallas_src>
import functools

import jax
import jax.numpy as jnp
from jax.experimental import pallas as pl
from jax.experimental.pallas import tpu as pltpu


def _round_up(x, m):
    return ((x + m - 1) // m) * m


def _qnet_kernel(x_ref,
                 w1_ref, b1_ref,
                 w2_ref, b2_ref,
                 w3_ref, b3_ref,
                 w4_ref, b4_ref,
                 out_ref):
    """Fused 4-layer MLP forward on one batch tile (all operands in VMEM)."""
    x = x_ref[...]

    h = jnp.dot(x, w1_ref[...], preferred_element_type=jnp.float32) + b1_ref[...]
    h = jnp.maximum(h, 0.0)

    h = jnp.dot(h, w2_ref[...], preferred_element_type=jnp.float32) + b2_ref[...]
    h = jnp.maximum(h, 0.0)

    h = jnp.dot(h, w3_ref[...], preferred_element_type=jnp.float32) + b3_ref[...]
    h = jnp.maximum(h, 0.0)

    h = jnp.dot(h, w4_ref[...], preferred_element_type=jnp.float32) + b4_ref[...]
    out_ref[...] = h.astype(out_ref.dtype)


@functools.partial(jax.jit, static_argnames=("block_b",))
def qnetwork_forward(state, params, *, block_b=4096):
    """state: [B, state_size] f32 -> action values [B, action_size] f32."""
    (w1, b1), (w2, b2), (w3, b3), (w4, b4) = params
    B, S = state.shape
    A = w4.shape[1]

    # Batch tile: large to amortize the ~0.35us per-grid-step overhead, clamped
    # (to a sublane multiple) for small B. No wrapper-side padding: Pallas masks
    # the ragged last tile's out-of-bounds rows on writeback.
    tb = min(block_b, _round_up(B, 8))
    grid = (pl.cdiv(B, tb),)

    def _const_map(i):
        # Weights/biases: same (only) block every grid step -> stay resident.
        return (0, 0)

    weight_specs = [pl.BlockSpec(arr.shape, _const_map)
                    for arr in (w1, b1, w2, b2, w3, b3, w4, b4)]

    out = pl.pallas_call(
        _qnet_kernel,
        out_shape=jax.ShapeDtypeStruct((B, A), jnp.float32),
        grid=grid,
        in_specs=[pl.BlockSpec((tb, S), lambda i: (i, 0))] + weight_specs,
        out_specs=pl.BlockSpec((tb, A), lambda i: (i, 0)),
        compiler_params=pltpu.CompilerParams(
            dimension_semantics=("parallel",)),
    )(state, w1, b1, w2, b2, w3, b3, w4, b4)

    return out


def init_params(key, state_size, action_size=3):
    """Deterministic init mimicking nn.Linear's U(-1/sqrt(fan_in), 1/sqrt(fan_in))."""
    dims = [state_size, 64, 32, 8, action_size]
    params = []
    for i in range(4):
        fan_in, fan_out = dims[i], dims[i + 1]
        key, kw, kb = jax.random.split(key, 3)
        bound = 1.0 / jnp.sqrt(jnp.float32(fan_in))
        w = jax.random.uniform(kw, (fan_in, fan_out), jnp.float32, -bound, bound)
        b = jax.random.uniform(kb, (1, fan_out), jnp.float32, -bound, bound)
        params.append((w, b))
    return params


def reference_forward(state, params):
    h = state
    for i, (w, b) in enumerate(params):
        h = h @ w + b
        if i < len(params) - 1:
            h = jnp.maximum(h, 0.0)
    return h


if __name__ == "__main__":
    key = jax.random.PRNGKey(0)
    batch, state_size, action_size = 2, 32, 3

    kp, kx = jax.random.split(key)
    params = init_params(kp, state_size, action_size)

    # Small smoke-test batch (matches the module's typical inference use).
    state = jax.random.normal(kx, (batch, state_size), jnp.float32)
    out = jax.block_until_ready(qnetwork_forward(state, params))
    ref = reference_forward(state, params)
    assert out.shape == (batch, action_size)
    assert jnp.allclose(out, ref, atol=1e-4, rtol=1e-4), "mismatch (small batch)"

    # Larger, non-tile-aligned batch with a small tile to exercise the
    # multi-step grid + ragged last-tile masking path.
    big_b = 2500
    state_big = jax.random.normal(kx, (big_b, state_size), jnp.float32)
    out_big = jax.block_until_ready(
        qnetwork_forward(state_big, params, block_b=1024))
    ref_big = reference_forward(state_big, params)
    assert out_big.shape == (big_b, action_size)
    assert jnp.allclose(out_big, ref_big, atol=1e-4, rtol=1e-4), "mismatch (large batch)"

    print("KERNEL_OK")
</pallas_src>

<mosaic_0001>
module attributes {stable_mosaic.version = 11 : i64} {
  func.func @_qnet_kernel(%arg0: i32, %arg1: memref<8x32xf32, #tpu.memory_space<vmem>>, %arg2: memref<32x64xf32, #tpu.memory_space<vmem>>, %arg3: memref<1x64xf32, #tpu.memory_space<vmem>>, %arg4: memref<64x32xf32, #tpu.memory_space<vmem>>, %arg5: memref<1x32xf32, #tpu.memory_space<vmem>>, %arg6: memref<32x8xf32, #tpu.memory_space<vmem>>, %arg7: memref<1x8xf32, #tpu.memory_space<vmem>>, %arg8: memref<8x3xf32, #tpu.memory_space<vmem>>, %arg9: memref<1x3xf32, #tpu.memory_space<vmem>>, %arg10: memref<8x3xf32, #tpu.memory_space<vmem>>) attributes {dimension_semantics = [#tpu.dimension_semantics<parallel>], iteration_bounds = array<i64: 1>, scalar_prefetch = 0 : i64, scratch_operands = 0 : i64, tpu.core_type = #tpu.core_type<tc>, window_params = [{transform_indices = @transform_0, window_bounds = array<i64: 8, 32>}, {pipeline_mode = #tpu.pipeline_mode<synchronous>, transform_indices = @transform_1, window_bounds = array<i64: 32, 64>}, {pipeline_mode = #tpu.pipeline_mode<synchronous>, transform_indices = @transform_2, window_bounds = array<i64: 1, 64>}, {pipeline_mode = #tpu.pipeline_mode<synchronous>, transform_indices = @transform_3, window_bounds = array<i64: 64, 32>}, {pipeline_mode = #tpu.pipeline_mode<synchronous>, transform_indices = @transform_4, window_bounds = array<i64: 1, 32>}, {pipeline_mode = #tpu.pipeline_mode<synchronous>, transform_indices = @transform_5, window_bounds = array<i64: 32, 8>}, {pipeline_mode = #tpu.pipeline_mode<synchronous>, transform_indices = @transform_6, window_bounds = array<i64: 1, 8>}, {pipeline_mode = #tpu.pipeline_mode<synchronous>, transform_indices = @transform_7, window_bounds = array<i64: 8, 3>}, {pipeline_mode = #tpu.pipeline_mode<synchronous>, transform_indices = @transform_8, window_bounds = array<i64: 1, 3>}, {transform_indices = @transform_9, window_bounds = array<i64: 8, 3>}]} {
    %c0 = arith.constant 0 : index
    %c0_0 = arith.constant 0 : index
    %0 = vector.load %arg1[%c0, %c0_0] : memref<8x32xf32, #tpu.memory_space<vmem>>, vector<8x32xf32>
    %c0_1 = arith.constant 0 : index
    %c0_2 = arith.constant 0 : index
    %1 = vector.load %arg2[%c0_1, %c0_2] : memref<32x64xf32, #tpu.memory_space<vmem>>, vector<32x64xf32>
    %cst = arith.constant dense<0.000000e+00> : vector<8x64xf32>
    %2 = tpu.matmul %0, %1, %cst {dimension_numbers = #tpu.dot_dimension_numbers<[1], [0], [0], [1], [0, 0, 1, 1], [], []>} : vector<8x32xf32>, vector<32x64xf32>, vector<8x64xf32> -> vector<8x64xf32>
    %c0_3 = arith.constant 0 : index
    %c0_4 = arith.constant 0 : index
    %3 = vector.load %arg3[%c0_3, %c0_4] : memref<1x64xf32, #tpu.memory_space<vmem>>, vector<1x64xf32>
    %4 = vector.broadcast %3 : vector<1x64xf32> to vector<8x64xf32>
    %5 = arith.addf %2, %4 : vector<8x64xf32>
    %cst_5 = arith.constant 0.000000e+00 : f32
    %6 = vector.broadcast %cst_5 : f32 to vector<8x64xf32>
    %7 = arith.maximumf %5, %6 : vector<8x64xf32>
    %c0_6 = arith.constant 0 : index
    %c0_7 = arith.constant 0 : index
    %8 = vector.load %arg4[%c0_6, %c0_7] : memref<64x32xf32, #tpu.memory_space<vmem>>, vector<64x32xf32>
    %cst_8 = arith.constant dense<0.000000e+00> : vector<8x32xf32>
    %9 = tpu.matmul %7, %8, %cst_8 {dimension_numbers = #tpu.dot_dimension_numbers<[1], [0], [0], [1], [0, 0, 1, 1], [], []>} : vector<8x64xf32>, vector<64x32xf32>, vector<8x32xf32> -> vector<8x32xf32>
    %c0_9 = arith.constant 0 : index
    %c0_10 = arith.constant 0 : index
    %10 = vector.load %arg5[%c0_9, %c0_10] : memref<1x32xf32, #tpu.memory_space<vmem>>, vector<1x32xf32>
    %11 = vector.broadcast %10 : vector<1x32xf32> to vector<8x32xf32>
    %12 = arith.addf %9, %11 : vector<8x32xf32>
    %cst_11 = arith.constant 0.000000e+00 : f32
    %13 = vector.broadcast %cst_11 : f32 to vector<8x32xf32>
    %14 = arith.maximumf %12, %13 : vector<8x32xf32>
    %c0_12 = arith.constant 0 : index
    %c0_13 = arith.constant 0 : index
    %15 = vector.load %arg6[%c0_12, %c0_13] : memref<32x8xf32, #tpu.memory_space<vmem>>, vector<32x8xf32>
    %cst_14 = arith.constant dense<0.000000e+00> : vector<8x8xf32>
    %16 = tpu.matmul %14, %15, %cst_14 {dimension_numbers = #tpu.dot_dimension_numbers<[1], [0], [0], [1], [0, 0, 1, 1], [], []>} : vector<8x32xf32>, vector<32x8xf32>, vector<8x8xf32> -> vector<8x8xf32>
    %c0_15 = arith.constant 0 : index
    %c0_16 = arith.constant 0 : index
    %17 = vector.load %arg7[%c0_15, %c0_16] : memref<1x8xf32, #tpu.memory_space<vmem>>, vector<1x8xf32>
    %18 = vector.broadcast %17 : vector<1x8xf32> to vector<8x8xf32>
    %19 = arith.addf %16, %18 : vector<8x8xf32>
    %cst_17 = arith.constant 0.000000e+00 : f32
    %20 = vector.broadcast %cst_17 : f32 to vector<8x8xf32>
    %21 = arith.maximumf %19, %20 : vector<8x8xf32>
    %c0_18 = arith.constant 0 : index
    %c0_19 = arith.constant 0 : index
    %22 = vector.load %arg8[%c0_18, %c0_19] : memref<8x3xf32, #tpu.memory_space<vmem>>, vector<8x3xf32>
    %cst_20 = arith.constant dense<0.000000e+00> : vector<8x3xf32>
    %23 = tpu.matmul %21, %22, %cst_20 {dimension_numbers = #tpu.dot_dimension_numbers<[1], [0], [0], [1], [0, 0, 1, 1], [], []>} : vector<8x8xf32>, vector<8x3xf32>, vector<8x3xf32> -> vector<8x3xf32>
    %c0_21 = arith.constant 0 : index
    %c0_22 = arith.constant 0 : index
    %24 = vector.load %arg9[%c0_21, %c0_22] : memref<1x3xf32, #tpu.memory_space<vmem>>, vector<1x3xf32>
    %25 = vector.broadcast %24 : vector<1x3xf32> to vector<8x3xf32>
    %26 = arith.addf %23, %25 : vector<8x3xf32>
    %c0_23 = arith.constant 0 : index
    %c0_24 = arith.constant 0 : index
    %27 = vector.load %arg10[%c0_23, %c0_24] : memref<8x3xf32, #tpu.memory_space<vmem>>, vector<8x3xf32>
    tpu.vector_store %arg10[%c0_23, %c0_24], %26 {strides = array<i32>} : memref<8x3xf32, #tpu.memory_space<vmem>>, vector<8x3xf32>,
    return
  }
  func.func @transform_0(%arg0: i32) -> (i32, i32) {
    %c0_i32 = arith.constant 0 : i32
    %c0_i32_0 = arith.constant 0 : i32
    return %arg0, %c0_i32 : i32, i32
  }
  func.func @transform_1(%arg0: i32) -> (i32, i32) {
    %c0_i32 = arith.constant 0 : i32
    %c0_i32_0 = arith.constant 0 : i32
    %c0_i32_1 = arith.constant 0 : i32
    return %c0_i32, %c0_i32_0 : i32, i32
  }
  func.func @transform_2(%arg0: i32) -> (i32, i32) {
    %c0_i32 = arith.constant 0 : i32
    %c0_i32_0 = arith.constant 0 : i32
    %c0_i32_1 = arith.constant 0 : i32
    return %c0_i32, %c0_i32_0 : i32, i32
  }
  func.func @transform_3(%arg0: i32) -> (i32, i32) {
    %c0_i32 = arith.constant 0 : i32
    %c0_i32_0 = arith.constant 0 : i32
    %c0_i32_1 = arith.constant 0 : i32
    return %c0_i32, %c0_i32_0 : i32, i32
  }
  func.func @transform_4(%arg0: i32) -> (i32, i32) {
    %c0_i32 = arith.constant 0 : i32
    %c0_i32_0 = arith.constant 0 : i32
    %c0_i32_1 = arith.constant 0 : i32
    return %c0_i32, %c0_i32_0 : i32, i32
  }
  func.func @transform_5(%arg0: i32) -> (i32, i32) {
    %c0_i32 = arith.constant 0 : i32
    %c0_i32_0 = arith.constant 0 : i32
    %c0_i32_1 = arith.constant 0 : i32
    return %c0_i32, %c0_i32_0 : i32, i32
  }
  func.func @transform_6(%arg0: i32) -> (i32, i32) {
    %c0_i32 = arith.constant 0 : i32
    %c0_i32_0 = arith.constant 0 : i32
    %c0_i32_1 = arith.constant 0 : i32
    return %c0_i32, %c0_i32_0 : i32, i32
  }
  func.func @transform_7(%arg0: i32) -> (i32, i32) {
    %c0_i32 = arith.constant 0 : i32
    %c0_i32_0 = arith.constant 0 : i32
    %c0_i32_1 = arith.constant 0 : i32
    return %c0_i32, %c0_i32_0 : i32, i32
  }
  func.func @transform_8(%arg0: i32) -> (i32, i32) {
    %c0_i32 = arith.constant 0 : i32
    %c0_i32_0 = arith.constant 0 : i32
    %c0_i32_1 = arith.constant 0 : i32
    return %c0_i32, %c0_i32_0 : i32, i32
  }
  func.func @transform_9(%arg0: i32) -> (i32, i32) {
    %c0_i32 = arith.constant 0 : i32
    %c0_i32_0 = arith.constant 0 : i32
    return %arg0, %c0_i32 : i32, i32
  }
}

</mosaic_0001>

<bundles_post_ra>
// kernel: qnetwork_forward.1
= control target key start
LH: loop header
LB: loop body
LE: loop exit
PB: predicated region body
PF: predicated region fallthrough
CT: control target
= control target key end

     0   :  { %14 = vsyncpa [#allocation3], 0  ;;  %v524_v2 = vmov 0.0|0.0   ;;  %vm525_vm0 = vmmov 0   ;;  %v526_v6 = vmov 0.0   ;;  %vm45_vm1 = vcmask 261120   ;;  %s664_s0 = inlined_call_operand.vmem [shape: f32[2,32], index: 0, kind: input, shape index: {}]   ;;  %s665_s1 = inlined_call_operand.vmem [shape: f32[32,64], index: 1, kind: input, shape index: {}]   ;;  %s666_s2 = inlined_call_operand.vmem [shape: f32[1,64], index: 2, kind: input, shape index: {}]   ;;  %s667_s3 = inlined_call_operand.vmem [shape: f32[64,32], index: 3, kind: input, shape index: {}]   ;;  %s668_s4 = inlined_call_operand.vmem [shape: f32[1,32], index: 4, kind: input, shape index: {}]   ;;  %s669_s5 = inlined_call_operand.vmem [shape: f32[32,8], index: 5, kind: input, shape index: {}]   ;;  %s670_s6 = inlined_call_operand.vmem [shape: f32[1,8], index: 6, kind: input, shape index: {}]   ;;  %s671_s7 = inlined_call_operand.vmem [shape: f32[8,3], index: 7, kind: input, shape index: {}]   ;;  %s672_s8 = inlined_call_operand.vmem [shape: f32[1,3], index: 8, kind: input, shape index: {}]   ;;  %s673_s9 = inlined_call_operand.hbm [shape: f32[2,3], index: 9, kind: output, shape index: {}]  }
   0x1   :  { %v34_v0 = vld [vmem:[%s665_s1] sm:$0xff]  ;;  %v35_v1 = vld [vmem:[%s665_s1 + $0x8] sm:$0xff]  ;;  %470 = vmatprep.subr.bf16.mxu0 %v524_v2  ;;  %v36_v4 = vld [vmem:[%s665_s1 + $0x10] sm:$0xff]  ;;  %476 = vmatprep.subr.bf16.mxu1 %v524_v2  ;;  %vm135_vm2 = vcmask 523264   ;;  %vm303_vm3 = vcmask 64512   ;;  %vm377_vm4 = vcmask 23552  }
   0x2   :  { %v471_v3 = vpack.c.bf16 %v35_v1, %v34_v0  ;;  %v37_v5 = vld [vmem:[%s665_s1 + $0x18] sm:$0xff]  ;;  %432 = vmatprep.mubr.msk.f32.mxu0 %vm525_vm0, %v526_v6  ;;  %v120_v7 = vld [vmem:[%s667_s3] sm:$0xff]  ;;  %v121_v8 = vld [vmem:[%s667_s3 + $0x8] sm:$0xff]  ;;  %451 = vmatprep.mubr.msk.f32.mxu1 %vm525_vm0, %v526_v6 }
   0x3   :  { %v122_v9 = vld [vmem:[%s667_s3 + $0x10] sm:$0xff]  ;;  %v474_v10 = vpack.c.bf16 %v37_v5, %v36_v4  ;;  %v477_v11 = vpack.c.bf16 %v121_v8, %v120_v7  ;;  %v123_v12 = vld [vmem:[%s667_s3 + $0x18] sm:$0xff]  ;;  %v124_v14 = vld [vmem:[%s667_s3 + $0x20] sm:$0xff] }
   0x4   :  { %472 = vmatpush3.bf16.msra.mxu0 %v471_v3  ;;  %v480_v13 = vpack.c.bf16 %v123_v12, %v122_v9  ;;  %v125_v15 = vld [vmem:[%s667_s3 + $0x28] sm:$0xff]  ;;  %v33_v16 = vld [vmem:[%s664_s0] sm:$0xff]  ;;  %v126_v18 = vld [vmem:[%s667_s3 + $0x30] sm:$0xff] }
   0x5   :  { %473 = vmatprep.subr.bf16.mxu0 %v524_v2  ;;  %478 = vmatpush3.bf16.msra.mxu1 %v477_v11  ;;  %v483_v17 = vpack.c.bf16 %v125_v15, %v124_v14  ;;  %v127_v19 = vld [vmem:[%s667_s3 + $0x38] sm:$0xff]  ;;  %v210_v21 = vld [vmem:[%s669_s5] sm:$0xff]  ;;  %v211_v22 = vld [vmem:[%s669_s5 + $0x8] sm:$0xff] }
   0x6   :  { %479 = vmatprep.subr.bf16.mxu1 %v524_v2  ;;  %v486_v20 = vpack.c.bf16 %v127_v19, %v126_v18  ;;  %v489_v23 = vpack.c.bf16 %v211_v22, %v210_v21  ;;  %v395_v24 = vld [vmem:[%s666_s2] ss:$0 sm:$0xff]  ;;  %v212_v29 = vld [vmem:[%s669_s5 + $0x10] sm:$0xff]  ;;  %v213_v30 = vld [vmem:[%s669_s5 + $0x18] sm:$0xff] }
   0x7   :  { %v492_v31 = vpack.c.bf16 %v213_v30, %v212_v29  ;;  %v397_v32 = vld [vmem:[%s668_s4] ss:$0 sm:$0xff] }
   0x8   :  { %475 = vmatpush3.bf16.msra.mxu0 %v474_v10  ;;  %v295_v37 = vld [vmem:[%s671_s7] sm:$0xff] }
   0x9   :  { %488 = vmatprep.subr.bf16.mxu0 %v524_v2  ;;  %481 = vmatpush3.bf16.msra.mxu1 %v480_v13  ;;  %v399_v38 = vld [vmem:[%s670_s6] ss:$0 sm:$0xff] }
   0xa   :  { %482 = vmatprep.subr.bf16.mxu1 %v524_v2  ;;  %v401_v43 = vld [vmem:[%s672_s8] ss:$0 sm:$0xff] }
   0xb   :  { %433 = vmatmul.mubr.msk.f32.vlgmr.msra.gmra.mrb[0].mxu0 %vm45_vm1, %v33_v16 }
   0xc   :  { %462 = vmatprep.mubr.msk.f32.mxu0 %vm525_vm0, %v526_v6  ;;  %490 = vmatpush3.bf16.msra.mxu0 %v489_v23 }
   0xd   :  { %484 = vmatpush3.bf16.msra.mxu1 %v483_v17  ;;  %491 = vmatprep.subr.bf16.mxu0 %v524_v2 }
   0xe   :  { %485 = vmatprep.subr.bf16.mxu1 %v524_v2 }
  0x10   :  { %493 = vmatpush3.bf16.msra.mxu0 %v492_v31 }
  0x11   :  { %487 = vmatpush3.bf16.msra.mxu1 %v486_v20  ;;  %465 = vmatprep.subr.mxu0 %v526_v6 }
  0xde   :  { %v115_v25 = vpop.f32.mrb[0].mxu0 }
  0xdf   :  { %v116_v26 = vadd.f32 %v395_v24, %v115_v25  ;;  %v434_v27 = vpop.f32.mrb[1].mxu0 }
  0xe1   :  { %v119_v28 = vmax.f32 %v116_v26, 0.0 }
  0xe3   :  { %452 = vmatmul.mubr.msk.f32.vlgmr.msra.gmra.mrb[0].mxu1 %vm135_vm2, %v119_v28 }
 0x1b6   :  { %v205_v33 = vpop.f32.mrb[0].mxu1 }
 0x1b7   :  { %v206_v34 = vadd.f32 %v397_v32, %v205_v33  ;;  %v453_v35 = vpop.f32.mrb[1].mxu1 }
 0x1b9   :  { %v209_v36 = vmax.f32 %v206_v34, 0.0 }
 0x1bb   :  { %463 = vmatmul.mubr.msk.f32.vlgmr.msra.gmra.mrb[2].mxu0 %vm45_vm1, %v209_v36 }
 0x1bc   :  { %467 = vmatprep.mubr.msk.f32.mxu0 %vm525_vm0, %v526_v6  ;;  %466 = vmatpush3.msra.mxu0 %v295_v37 }
 0x28e   :  { %v290_v39 = vpop.f32.mrb[2].mxu0 }
 0x28f   :  { %v291_v40 = vadd.f32 %v399_v38, %v290_v39  ;;  %v464_v41 = vpop.f32.mrb[3].mxu0 }
 0x291   :  { %v294_v42 = vmax.f32 %v291_v40, 0.0 }
 0x293   :  { %468 = vmatmul.mubr.msk.f32.vlgmr.msra.gmra.mrb[4].mxu0 %vm303_vm3, %v294_v42 }
 0x366   :  { %v373_v44 = vpop.f32.mrb[4].mxu0 }
 0x367   :  { %v374_v45 = vadd.f32 %v401_v43, %v373_v44  ;;  %v469_v46 = vpop.f32.mrb[5].mxu0 }
 0x369   :  { %378 = vst.msk [vmem:[#allocation2] sm:$0xff] %vm377_vm4, %v374_v45 }
 0x36a   :  { %383 = vsyncadd [#allocation3], 96  ;;  %s527_s7 = smov [#allocation2]  }
 0x36b   :  { %s384_s25 = sshll.u32 %s527_s7, 4  ;;  %s385_s25 = int_to_ptr.vmem [resolvable:$true] %s384_s25 }
 0x36c   :  { %s500_s6 = scalar_lea.vmem %s385_s25, 32  ;;  %s504_s26 = scalar_lea.vmem %s385_s25, 128 }
 0x36d   :  { %p501_p0 = scmp.ne.s32.totalorder %s385_s25, %s500_s6  ;;  %p505_p1 = scmp.lt.s32.totalorder %s385_s25, %s385_s25 }
 0x36e   :  { %p506_p2 = scmp.lt.s32.totalorder %s504_s26, %s500_s6 }
 0x370   :  { %p507_p3 = por %p506_p2, %p505_p1 }
 0x372   :  { %p508_p4 = pnand %p507_p3, %p501_p0 }
 0x374   :  { %511 = shalt.err (!%p508_p4)
}
 0x375   :  { %s512_s8 = scalar_lea.hbm %s673_s9, 32 }
 0x376   :  { %p513_p5 = scmp.ne.s32.totalorder %s673_s9, %s512_s8  ;;  %p516_p6 = scmp.lt.u32.totalorder %s512_s8, %s673_s9 }
 0x378   :  { %p518_p7 = pnand %p516_p6, %p513_p5 }
 0x37a   :  { %521 = shalt.err (!%p518_p7)
}
 0x37b   :  { %s528_s12 = smov 32   ;;  %s529_s0 = smov 2  }
 0x37c   :  { %390 = dma.vmem_to_hbm [thread:$0]  %s385_s25, 32, %s673_s9, [#allocation3], %s528_s12, %s528_s12, %s529_s0  }
 0x37d   :  { %522 = dma.done.wait [#allocation3], 128  }
 0x37e   :  { %523 = vsyncadd [#allocation3], 4294967168 }
 0x37f   :  { %394 = vsyncpa [#allocation3], 1 }

</bundles_post_ra>
